<compile_context>
chip_gen: v5e
topology: v5e:2x2
jax: 0.10.0
libtpu: 0.0.40
codegen_flags: <defaults>
</compile_context>

<pallas_src>
import functools

import jax
import jax.numpy as jnp
from jax.experimental import pallas as pl
from jax.experimental.pallas import tpu as pltpu


# ----------------------------------------------------------------------------
# Pallas kernel: one grid step = TILE_H output rows of one image.
# Layout: rows on sublanes, (W * channels) packed on the lane axis.
# ----------------------------------------------------------------------------
def _resblock_kernel(x_ref,                    # (H+4, W*Cin)   f32 (H zero-padded by 2)
                     t1_ref, s1_ref, b1_ref,   # (3, W*Cin, W*Cmid) bf16, (1, W*Cmid) f32 x2
                     t2_ref, s2_ref, b2_ref,   # (3, W*Cmid, W*Cout) bf16, (1, W*Cout) f32 x2
                     sw_ref, ss_ref, bs_ref,   # (W*Cin, W*Cout) bf16,    (1, W*Cout) f32 x2
                     o_ref):                   # (TILE_H, W*Cout) f32
    th, lanes_out = o_ref.shape
    lanes_mid = s1_ref.shape[1]
    h_total = pl.num_programs(1) * th
    j = pl.program_id(1)
    r0 = pl.multiple_of(j * th, th)            # tile start row (padded coords)

    f32, bf16 = jnp.float32, jnp.bfloat16

    # ---- conv1 (3x3, pad 1) + BN1 + ReLU on TILE_H+2 rows (1 halo row each side)
    acc1 = jnp.zeros((th + 2, lanes_mid), f32)
    for kh in range(3):
        a = x_ref[pl.ds(r0 + kh, th + 2), :].astype(bf16)
        acc1 = acc1 + jnp.dot(a, t1_ref[kh], preferred_element_type=f32)
    h1 = jnp.maximum(acc1 * s1_ref[...] + b1_ref[...], 0.0)

    # rows outside [0, H) are conv2's zero padding -> force them to zero
    row = jax.lax.broadcasted_iota(jnp.int32, h1.shape, 0) + (j * th - 1)
    h1 = jnp.where((row >= 0) & (row < h_total), h1, 0.0)

    # ---- conv2 (3x3, pad 1) + BN2
    acc2 = jnp.zeros((th, lanes_out), f32)
    for kh in range(3):
        acc2 = acc2 + jnp.dot(h1[kh:kh + th].astype(bf16), t2_ref[kh],
                              preferred_element_type=f32)
    main = acc2 * s2_ref[...] + b2_ref[...]

    # ---- shortcut: 1x1 conv + BN (interior rows of the halo window)
    xs = x_ref[pl.ds(r0 + 2, th), :].astype(bf16)
    sc = jnp.dot(xs, sw_ref[...], preferred_element_type=f32)
    sc = sc * ss_ref[...] + bs_ref[...]

    # ---- residual add + ReLU; full-width (128-lane) store
    o_ref[...] = jnp.maximum(main + sc, 0.0)


# ----------------------------------------------------------------------------
# Wrapper-side weight packing (glue, runs once under jit).
# ----------------------------------------------------------------------------
def _fold_bn(gamma, beta, mean, var, eps=1e-5):
    scale = gamma / jnp.sqrt(var + eps)
    bias = beta - mean * scale
    return scale.astype(jnp.float32), bias.astype(jnp.float32)


def _conv3x3_lane_weights(w_oihw, W):
    """(Cout, Cin, 3, 3) -> (3, W*Cin, W*Cout) per-kh block-Toeplitz matrices.

    T[kh][wi*Cin+ci, wo*Cout+co] = w[co, ci, kh, kw] iff wi == wo + kw - 1
    (zero otherwise), which folds the 3 kw taps and the width zero-padding of a
    pad=1 conv into the matmul weight; the kernel only shifts rows (kh).
    """
    Cout, Cin, KH, KW = w_oihw.shape
    w_t = jnp.transpose(w_oihw, (2, 3, 1, 0)).astype(jnp.float32)   # (KH, KW, Cin, Cout)
    wi = jnp.arange(W)[:, None, None]
    wo = jnp.arange(W)[None, :, None]
    kw = jnp.arange(KW)[None, None, :]
    ind = (wi == wo + kw - 1).astype(jnp.float32)                   # (W, W, KW)
    t = jnp.einsum('iok,hkcd->hicod', ind, w_t)                     # (KH, W, Cin, W, Cout)
    return t.reshape(KH, W * Cin, W * Cout)


def _conv1x1_lane_weights(w_oi11, W):
    """(Cout, Cin, 1, 1) -> (W*Cin, W*Cout) block-diagonal matrix."""
    w_t = jnp.transpose(w_oi11[:, :, 0, 0], (1, 0)).astype(jnp.float32)  # (Cin, Cout)
    cin, cout = w_t.shape
    eye = jnp.eye(W, dtype=jnp.float32)
    return jnp.einsum('io,cd->icod', eye, w_t).reshape(W * cin, W * cout)


@functools.partial(jax.jit, static_argnames=("tile_h",))
def block_with_shortcut_forward(x_nchw, params, tile_h=8):
    """x_nchw: (N, Cin, H, W) float32.  Returns (N, Cout, H, W) float32."""
    N, Cin, H, W = x_nchw.shape
    w1, bn1, w2, bn2, ws, bns = (params["w1"], params["bn1"], params["w2"],
                                 params["bn2"], params["ws"], params["bns"])
    Cmid, Cout = w1.shape[0], w2.shape[0]
    assert H % tile_h == 0, (H, tile_h)

    # ---- glue: NCHW -> rows x (W*Cin) lanes, H zero-padded by 2 (two 3x3 convs)
    x_rows = jnp.transpose(x_nchw, (0, 2, 3, 1)).astype(jnp.float32)
    x_rows = jnp.pad(x_rows, ((0, 0), (2, 2), (0, 0), (0, 0)))
    x_rows = x_rows.reshape(N, H + 4, W * Cin)

    # ---- glue: fold BN, build lane-packed conv weights (bf16 for the MXU)
    s1, b1 = _fold_bn(*bn1)
    s2, b2 = _fold_bn(*bn2)
    ss, bs = _fold_bn(*bns)
    t1 = _conv3x3_lane_weights(w1, W).astype(jnp.bfloat16)   # (3, W*Cin,  W*Cmid)
    t2 = _conv3x3_lane_weights(w2, W).astype(jnp.bfloat16)   # (3, W*Cmid, W*Cout)
    sw = _conv1x1_lane_weights(ws, W).astype(jnp.bfloat16)   # (W*Cin, W*Cout)
    s1_l, b1_l = jnp.tile(s1, W)[None, :], jnp.tile(b1, W)[None, :]   # (1, W*Cmid)
    s2_l, b2_l = jnp.tile(s2, W)[None, :], jnp.tile(b2, W)[None, :]   # (1, W*Cout)
    ss_l, bs_l = jnp.tile(ss, W)[None, :], jnp.tile(bs, W)[None, :]   # (1, W*Cout)

    grid = (N, H // tile_h)
    const2 = lambda n, j: (0, 0)
    const3 = lambda n, j: (0, 0, 0)

    out = pl.pallas_call(
        _resblock_kernel,
        out_shape=jax.ShapeDtypeStruct((N, H, W * Cout), jnp.float32),
        grid=grid,
        in_specs=[
            # full (H-padded) image of batch n: constant over the row-tile axis,
            # so it stays VMEM-resident while the tiles stream out.
            pl.BlockSpec((None, H + 4, W * Cin), lambda n, j: (n, 0, 0)),
            # weights / folded-BN vectors: constant block -> resident across grid.
            pl.BlockSpec((3, W * Cin, W * Cmid), const3),
            pl.BlockSpec((1, W * Cmid), const2),
            pl.BlockSpec((1, W * Cmid), const2),
            pl.BlockSpec((3, W * Cmid, W * Cout), const3),
            pl.BlockSpec((1, W * Cout), const2),
            pl.BlockSpec((1, W * Cout), const2),
            pl.BlockSpec((W * Cin, W * Cout), const2),
            pl.BlockSpec((1, W * Cout), const2),
            pl.BlockSpec((1, W * Cout), const2),
        ],
        out_specs=pl.BlockSpec((None, tile_h, W * Cout), lambda n, j: (n, j, 0)),
        compiler_params=pltpu.CompilerParams(
            dimension_semantics=("parallel", "parallel"),
            vmem_limit_bytes=32 * 1024 * 1024),
    )(x_rows, t1, s1_l, b1_l, t2, s2_l, b2_l, sw, ss_l, bs_l)

    # ---- glue: (N, H, W*Cout) -> NCHW
    return jnp.transpose(out.reshape(N, H, W, Cout), (0, 3, 1, 2))


# ----------------------------------------------------------------------------
# Pure-JAX reference (mirrors the PyTorch module, NCHW, f32) for verification.
# ----------------------------------------------------------------------------
def _reference_forward(x, params, eps=1e-5):
    def bn(y, bnp):
        g, b, m, v = bnp
        return (y - m[None, :, None, None]) / jnp.sqrt(v[None, :, None, None] + eps) \
            * g[None, :, None, None] + b[None, :, None, None]

    def conv(y, w, pad):
        return jax.lax.conv_general_dilated(
            y, w, window_strides=(1, 1), padding=[(pad, pad), (pad, pad)],
            dimension_numbers=("NCHW", "OIHW", "NCHW"))

    out = jax.nn.relu(bn(conv(x, params["w1"], 1), params["bn1"]))
    out = bn(conv(out, params["w2"], 1), params["bn2"])
    sc = bn(conv(x, params["ws"], 0), params["bns"])
    return jax.nn.relu(out + sc)


def _make_params(key, cin, cmid, cout):
    ks = jax.random.split(key, 6)

    def bn_params(k, c):
        k1, k2, k3, k4 = jax.random.split(k, 4)
        gamma = jax.random.uniform(k1, (c,), jnp.float32, 0.8, 1.2)
        beta = 0.1 * jax.random.normal(k2, (c,), jnp.float32)
        mean = 0.1 * jax.random.normal(k3, (c,), jnp.float32)
        var = jax.random.uniform(k4, (c,), jnp.float32, 0.5, 1.5)
        return (gamma, beta, mean, var)

    return {
        "w1": 0.2 * jax.random.normal(ks[0], (cmid, cin, 3, 3), jnp.float32),
        "bn1": bn_params(ks[1], cmid),
        "w2": 0.2 * jax.random.normal(ks[2], (cout, cmid, 3, 3), jnp.float32),
        "bn2": bn_params(ks[3], cout),
        "ws": 0.2 * jax.random.normal(ks[4], (cout, cin, 1, 1), jnp.float32),
        "bns": bn_params(ks[5], cout),
    }


if __name__ == "__main__":
    N, Cin, H, W = 2, 4, 16, 16
    Cmid = Cout = 8

    key = jax.random.PRNGKey(0)
    kx, kp = jax.random.split(key)
    x = jax.random.normal(kx, (N, Cin, H, W), jnp.float32)
    params = _make_params(kp, Cin, Cmid, Cout)

    out = jax.block_until_ready(block_with_shortcut_forward(x, params))
    ref = jax.block_until_ready(_reference_forward(x, params))

    assert out.shape == (N, Cout, H, W), out.shape
    max_err = float(jnp.max(jnp.abs(out - ref)))
    # bf16 matmul inputs with f32 accumulation -> loosened tolerance vs f32 ref.
    assert jnp.allclose(out, ref, rtol=5e-2, atol=5e-2), max_err

    print("KERNEL_OK")
</pallas_src>

<mosaic_0001>
module attributes {stable_mosaic.version = 11 : i64} {
  func.func @_resblock_kernel(%arg0: i32, %arg1: i32, %arg2: memref<1x20x64xf32, #tpu.memory_space<vmem>>, %arg3: memref<3x64x128xbf16, #tpu.memory_space<vmem>>, %arg4: memref<1x128xf32, #tpu.memory_space<vmem>>, %arg5: memref<1x128xf32, #tpu.memory_space<vmem>>, %arg6: memref<3x128x128xbf16, #tpu.memory_space<vmem>>, %arg7: memref<1x128xf32, #tpu.memory_space<vmem>>, %arg8: memref<1x128xf32, #tpu.memory_space<vmem>>, %arg9: memref<64x128xbf16, #tpu.memory_space<vmem>>, %arg10: memref<1x128xf32, #tpu.memory_space<vmem>>, %arg11: memref<1x128xf32, #tpu.memory_space<vmem>>, %arg12: memref<1x8x128xf32, #tpu.memory_space<vmem>>) attributes {dimension_semantics = [#tpu.dimension_semantics<parallel>, #tpu.dimension_semantics<parallel>], iteration_bounds = array<i64: 2, 2>, scalar_prefetch = 0 : i64, scratch_operands = 0 : i64, tpu.core_type = #tpu.core_type<tc>, window_params = [{transform_indices = @transform_0, window_bounds = array<i64: 1, 20, 64>}, {pipeline_mode = #tpu.pipeline_mode<synchronous>, transform_indices = @transform_1, window_bounds = array<i64: 3, 64, 128>}, {pipeline_mode = #tpu.pipeline_mode<synchronous>, transform_indices = @transform_2, window_bounds = array<i64: 1, 128>}, {pipeline_mode = #tpu.pipeline_mode<synchronous>, transform_indices = @transform_3, window_bounds = array<i64: 1, 128>}, {pipeline_mode = #tpu.pipeline_mode<synchronous>, transform_indices = @transform_4, window_bounds = array<i64: 3, 128, 128>}, {pipeline_mode = #tpu.pipeline_mode<synchronous>, transform_indices = @transform_5, window_bounds = array<i64: 1, 128>}, {pipeline_mode = #tpu.pipeline_mode<synchronous>, transform_indices = @transform_6, window_bounds = array<i64: 1, 128>}, {pipeline_mode = #tpu.pipeline_mode<synchronous>, transform_indices = @transform_7, window_bounds = array<i64: 64, 128>}, {pipeline_mode = #tpu.pipeline_mode<synchronous>, transform_indices = @transform_8, window_bounds = array<i64: 1, 128>}, {pipeline_mode = #tpu.pipeline_mode<synchronous>, transform_indices = @transform_9, window_bounds = array<i64: 1, 128>}, {transform_indices = @transform_10, window_bounds = array<i64: 1, 8, 128>}]} {
    %c8_i32 = arith.constant 8 : i32
    %0 = arith.muli %arg1, %c8_i32 : i32
    %1 = tpu.assume_multiple %0, 8 : i32
    %cst = arith.constant 0.000000e+00 : f32
    %2 = vector.broadcast %cst : f32 to vector<10x128xf32>
    %c0_i32 = arith.constant 0 : i32
    %3 = arith.addi %1, %c0_i32 : i32
    %c0 = arith.constant 0 : index
    %4 = arith.index_cast %3 : i32 to index
    %c0_0 = arith.constant 0 : index
    %5 = vector.load %arg2[%c0, %4, %c0_0] : memref<1x20x64xf32, #tpu.memory_space<vmem>>, vector<1x10x64xf32>
    %6 = vector.shape_cast %5 : vector<1x10x64xf32> to vector<10x64xf32>
    %7 = arith.truncf %6 : vector<10x64xf32> to vector<10x64xbf16>
    %c0_1 = arith.constant 0 : index
    %c0_2 = arith.constant 0 : index
    %c0_3 = arith.constant 0 : index
    %8 = vector.load %arg3[%c0_1, %c0_2, %c0_3] : memref<3x64x128xbf16, #tpu.memory_space<vmem>>, vector<1x64x128xbf16>
    %9 = vector.shape_cast %8 : vector<1x64x128xbf16> to vector<64x128xbf16>
    %cst_4 = arith.constant dense<0.000000e+00> : vector<10x128xf32>
    %10 = tpu.matmul %7, %9, %cst_4 {dimension_numbers = #tpu.dot_dimension_numbers<[1], [0], [0], [1], [0, 0, 1, 1], [], []>} : vector<10x64xbf16>, vector<64x128xbf16>, vector<10x128xf32> -> vector<10x128xf32>
    %11 = arith.addf %2, %10 : vector<10x128xf32>
    %c1_i32 = arith.constant 1 : i32
    %12 = arith.addi %1, %c1_i32 : i32
    %c0_5 = arith.constant 0 : index
    %13 = arith.index_cast %12 : i32 to index
    %c0_6 = arith.constant 0 : index
    %14 = vector.load %arg2[%c0_5, %13, %c0_6] : memref<1x20x64xf32, #tpu.memory_space<vmem>>, vector<1x10x64xf32>
    %15 = vector.shape_cast %14 : vector<1x10x64xf32> to vector<10x64xf32>
    %16 = arith.truncf %15 : vector<10x64xf32> to vector<10x64xbf16>
    %c1 = arith.constant 1 : index
    %c0_7 = arith.constant 0 : index
    %c0_8 = arith.constant 0 : index
    %17 = vector.load %arg3[%c1, %c0_7, %c0_8] : memref<3x64x128xbf16, #tpu.memory_space<vmem>>, vector<1x64x128xbf16>
    %18 = vector.shape_cast %17 : vector<1x64x128xbf16> to vector<64x128xbf16>
    %cst_9 = arith.constant dense<0.000000e+00> : vector<10x128xf32>
    %19 = tpu.matmul %16, %18, %cst_9 {dimension_numbers = #tpu.dot_dimension_numbers<[1], [0], [0], [1], [0, 0, 1, 1], [], []>} : vector<10x64xbf16>, vector<64x128xbf16>, vector<10x128xf32> -> vector<10x128xf32>
    %20 = arith.addf %11, %19 : vector<10x128xf32>
    %c2_i32 = arith.constant 2 : i32
    %21 = arith.addi %1, %c2_i32 : i32
    %c0_10 = arith.constant 0 : index
    %22 = arith.index_cast %21 : i32 to index
    %c0_11 = arith.constant 0 : index
    %23 = vector.load %arg2[%c0_10, %22, %c0_11] : memref<1x20x64xf32, #tpu.memory_space<vmem>>, vector<1x10x64xf32>
    %24 = vector.shape_cast %23 : vector<1x10x64xf32> to vector<10x64xf32>
    %25 = arith.truncf %24 : vector<10x64xf32> to vector<10x64xbf16>
    %c2 = arith.constant 2 : index
    %c0_12 = arith.constant 0 : index
    %c0_13 = arith.constant 0 : index
    %26 = vector.load %arg3[%c2, %c0_12, %c0_13] : memref<3x64x128xbf16, #tpu.memory_space<vmem>>, vector<1x64x128xbf16>
    %27 = vector.shape_cast %26 : vector<1x64x128xbf16> to vector<64x128xbf16>
    %cst_14 = arith.constant dense<0.000000e+00> : vector<10x128xf32>
    %28 = tpu.matmul %25, %27, %cst_14 {dimension_numbers = #tpu.dot_dimension_numbers<[1], [0], [0], [1], [0, 0, 1, 1], [], []>} : vector<10x64xbf16>, vector<64x128xbf16>, vector<10x128xf32> -> vector<10x128xf32>
    %29 = arith.addf %20, %28 : vector<10x128xf32>
    %c0_15 = arith.constant 0 : index
    %c0_16 = arith.constant 0 : index
    %30 = vector.load %arg4[%c0_15, %c0_16] : memref<1x128xf32, #tpu.memory_space<vmem>>, vector<1x128xf32>
    %31 = vector.broadcast %30 : vector<1x128xf32> to vector<10x128xf32>
    %32 = arith.mulf %29, %31 : vector<10x128xf32>
    %c0_17 = arith.constant 0 : index
    %c0_18 = arith.constant 0 : index
    %33 = vector.load %arg5[%c0_17, %c0_18] : memref<1x128xf32, #tpu.memory_space<vmem>>, vector<1x128xf32>
    %34 = vector.broadcast %33 : vector<1x128xf32> to vector<10x128xf32>
    %35 = arith.addf %32, %34 : vector<10x128xf32>
    %cst_19 = arith.constant 0.000000e+00 : f32
    %36 = vector.broadcast %cst_19 : f32 to vector<10x128xf32>
    %37 = arith.maximumf %35, %36 : vector<10x128xf32>
    %38 = tpu.iota {dimensions = array<i32: 0>} : vector<10x128xi32>
    %c8_i32_20 = arith.constant 8 : i32
    %39 = arith.muli %arg1, %c8_i32_20 : i32
    %c1_i32_21 = arith.constant 1 : i32
    %40 = arith.subi %39, %c1_i32_21 : i32
    %41 = vector.broadcast %40 : i32 to vector<10x128xi32>
    %42 = arith.addi %38, %41 : vector<10x128xi32>
    %c0_i32_22 = arith.constant 0 : i32
    %43 = vector.broadcast %c0_i32_22 : i32 to vector<10x128xi32>
    %44 = arith.cmpi sge, %42, %43 : vector<10x128xi32>
    %c16_i32 = arith.constant 16 : i32
    %45 = vector.broadcast %c16_i32 : i32 to vector<10x128xi32>
    %46 = arith.cmpi slt, %42, %45 : vector<10x128xi32>
    %47 = arith.andi %44, %46 : vector<10x128xi1>
    %cst_23 = arith.constant 0.000000e+00 : f32
    %48 = vector.broadcast %cst_23 : f32 to vector<10x128xf32>
    %49 = arith.select %47, %37, %48 : vector<10x128xi1>, vector<10x128xf32>
    %cst_24 = arith.constant 0.000000e+00 : f32
    %50 = vector.broadcast %cst_24 : f32 to vector<8x128xf32>
    %51 = vector.extract_strided_slice %49 {offsets = [0, 0], sizes = [8, 128], strides = [1, 1]} : vector<10x128xf32> to vector<8x128xf32>
    %52 = arith.truncf %51 : vector<8x128xf32> to vector<8x128xbf16>
    %c0_25 = arith.constant 0 : index
    %c0_26 = arith.constant 0 : index
    %c0_27 = arith.constant 0 : index
    %53 = vector.load %arg6[%c0_25, %c0_26, %c0_27] : memref<3x128x128xbf16, #tpu.memory_space<vmem>>, vector<1x128x128xbf16>
    %54 = vector.shape_cast %53 : vector<1x128x128xbf16> to vector<128x128xbf16>
    %cst_28 = arith.constant dense<0.000000e+00> : vector<8x128xf32>
    %55 = tpu.matmul %52, %54, %cst_28 {dimension_numbers = #tpu.dot_dimension_numbers<[1], [0], [0], [1], [0, 0, 1, 1], [], []>} : vector<8x128xbf16>, vector<128x128xbf16>, vector<8x128xf32> -> vector<8x128xf32>
    %56 = arith.addf %50, %55 : vector<8x128xf32>
    %57 = vector.extract_strided_slice %49 {offsets = [1, 0], sizes = [8, 128], strides = [1, 1]} : vector<10x128xf32> to vector<8x128xf32>
    %58 = arith.truncf %57 : vector<8x128xf32> to vector<8x128xbf16>
    %c1_29 = arith.constant 1 : index
    %c0_30 = arith.constant 0 : index
    %c0_31 = arith.constant 0 : index
    %59 = vector.load %arg6[%c1_29, %c0_30, %c0_31] : memref<3x128x128xbf16, #tpu.memory_space<vmem>>, vector<1x128x128xbf16>
    %60 = vector.shape_cast %59 : vector<1x128x128xbf16> to vector<128x128xbf16>
    %cst_32 = arith.constant dense<0.000000e+00> : vector<8x128xf32>
    %61 = tpu.matmul %58, %60, %cst_32 {dimension_numbers = #tpu.dot_dimension_numbers<[1], [0], [0], [1], [0, 0, 1, 1], [], []>} : vector<8x128xbf16>, vector<128x128xbf16>, vector<8x128xf32> -> vector<8x128xf32>
    %62 = arith.addf %56, %61 : vector<8x128xf32>
    %63 = vector.extract_strided_slice %49 {offsets = [2, 0], sizes = [8, 128], strides = [1, 1]} : vector<10x128xf32> to vector<8x128xf32>
    %64 = arith.truncf %63 : vector<8x128xf32> to vector<8x128xbf16>
    %c2_33 = arith.constant 2 : index
    %c0_34 = arith.constant 0 : index
    %c0_35 = arith.constant 0 : index
    %65 = vector.load %arg6[%c2_33, %c0_34, %c0_35] : memref<3x128x128xbf16, #tpu.memory_space<vmem>>, vector<1x128x128xbf16>
    %66 = vector.shape_cast %65 : vector<1x128x128xbf16> to vector<128x128xbf16>
    %cst_36 = arith.constant dense<0.000000e+00> : vector<8x128xf32>
    %67 = tpu.matmul %64, %66, %cst_36 {dimension_numbers = #tpu.dot_dimension_numbers<[1], [0], [0], [1], [0, 0, 1, 1], [], []>} : vector<8x128xbf16>, vector<128x128xbf16>, vector<8x128xf32> -> vector<8x128xf32>
    %68 = arith.addf %62, %67 : vector<8x128xf32>
    %c0_37 = arith.constant 0 : index
    %c0_38 = arith.constant 0 : index
    %69 = vector.load %arg7[%c0_37, %c0_38] : memref<1x128xf32, #tpu.memory_space<vmem>>, vector<1x128xf32>
    %70 = vector.broadcast %69 : vector<1x128xf32> to vector<8x128xf32>
    %71 = arith.mulf %68, %70 : vector<8x128xf32>
    %c0_39 = arith.constant 0 : index
    %c0_40 = arith.constant 0 : index
    %72 = vector.load %arg8[%c0_39, %c0_40] : memref<1x128xf32, #tpu.memory_space<vmem>>, vector<1x128xf32>
    %73 = vector.broadcast %72 : vector<1x128xf32> to vector<8x128xf32>
    %74 = arith.addf %71, %73 : vector<8x128xf32>
    %c2_i32_41 = arith.constant 2 : i32
    %75 = arith.addi %1, %c2_i32_41 : i32
    %c0_42 = arith.constant 0 : index
    %76 = arith.index_cast %75 : i32 to index
    %c0_43 = arith.constant 0 : index
    %77 = vector.load %arg2[%c0_42, %76, %c0_43] : memref<1x20x64xf32, #tpu.memory_space<vmem>>, vector<1x8x64xf32>
    %78 = vector.shape_cast %77 : vector<1x8x64xf32> to vector<8x64xf32>
    %79 = arith.truncf %78 : vector<8x64xf32> to vector<8x64xbf16>
    %c0_44 = arith.constant 0 : index
    %c0_45 = arith.constant 0 : index
    %80 = vector.load %arg9[%c0_44, %c0_45] : memref<64x128xbf16, #tpu.memory_space<vmem>>, vector<64x128xbf16>
    %cst_46 = arith.constant dense<0.000000e+00> : vector<8x128xf32>
    %81 = tpu.matmul %79, %80, %cst_46 {dimension_numbers = #tpu.dot_dimension_numbers<[1], [0], [0], [1], [0, 0, 1, 1], [], []>} : vector<8x64xbf16>, vector<64x128xbf16>, vector<8x128xf32> -> vector<8x128xf32>
    %c0_47 = arith.constant 0 : index
    %c0_48 = arith.constant 0 : index
    %82 = vector.load %arg10[%c0_47, %c0_48] : memref<1x128xf32, #tpu.memory_space<vmem>>, vector<1x128xf32>
    %83 = vector.broadcast %82 : vector<1x128xf32> to vector<8x128xf32>
    %84 = arith.mulf %81, %83 : vector<8x128xf32>
    %c0_49 = arith.constant 0 : index
    %c0_50 = arith.constant 0 : index
    %85 = vector.load %arg11[%c0_49, %c0_50] : memref<1x128xf32, #tpu.memory_space<vmem>>, vector<1x128xf32>
    %86 = vector.broadcast %85 : vector<1x128xf32> to vector<8x128xf32>
    %87 = arith.addf %84, %86 : vector<8x128xf32>
    %88 = arith.addf %74, %87 : vector<8x128xf32>
    %cst_51 = arith.constant 0.000000e+00 : f32
    %89 = vector.broadcast %cst_51 : f32 to vector<8x128xf32>
    %90 = arith.maximumf %88, %89 : vector<8x128xf32>
    %c0_52 = arith.constant 0 : index
    %c0_53 = arith.constant 0 : index
    %c0_54 = arith.constant 0 : index
    %91 = vector.load %arg12[%c0_52, %c0_53, %c0_54] : memref<1x8x128xf32, #tpu.memory_space<vmem>>, vector<1x8x128xf32>
    %92 = vector.shape_cast %91 : vector<1x8x128xf32> to vector<8x128xf32>
    %93 = vector.shape_cast %90 : vector<8x128xf32> to vector<1x8x128xf32>
    tpu.vector_store %arg12[%c0_52, %c0_53, %c0_54], %93 {strides = array<i32>} : memref<1x8x128xf32, #tpu.memory_space<vmem>>, vector<1x8x128xf32>,
    return
  }
  func.func @transform_0(%arg0: i32, %arg1: i32) -> (i32, i32, i32) {
    %c0_i32 = arith.constant 0 : i32
    %c0_i32_0 = arith.constant 0 : i32
    %c0_i32_1 = arith.constant 0 : i32
    return %arg0, %c0_i32, %c0_i32_0 : i32, i32, i32
  }
  func.func @transform_1(%arg0: i32, %arg1: i32) -> (i32, i32, i32) {
    %c0_i32 = arith.constant 0 : i32
    %c0_i32_0 = arith.constant 0 : i32
    %c0_i32_1 = arith.constant 0 : i32
    %c0_i32_2 = arith.constant 0 : i32
    return %c0_i32, %c0_i32_0, %c0_i32_1 : i32, i32, i32
  }
  func.func @transform_2(%arg0: i32, %arg1: i32) -> (i32, i32) {
    %c0_i32 = arith.constant 0 : i32
    %c0_i32_0 = arith.constant 0 : i32
    %c0_i32_1 = arith.constant 0 : i32
    return %c0_i32, %c0_i32_0 : i32, i32
  }
  func.func @transform_3(%arg0: i32, %arg1: i32) -> (i32, i32) {
    %c0_i32 = arith.constant 0 : i32
    %c0_i32_0 = arith.constant 0 : i32
    %c0_i32_1 = arith.constant 0 : i32
    return %c0_i32, %c0_i32_0 : i32, i32
  }
  func.func @transform_4(%arg0: i32, %arg1: i32) -> (i32, i32, i32) {
    %c0_i32 = arith.constant 0 : i32
    %c0_i32_0 = arith.constant 0 : i32
    %c0_i32_1 = arith.constant 0 : i32
    %c0_i32_2 = arith.constant 0 : i32
    return %c0_i32, %c0_i32_0, %c0_i32_1 : i32, i32, i32
  }
  func.func @transform_5(%arg0: i32, %arg1: i32) -> (i32, i32) {
    %c0_i32 = arith.constant 0 : i32
    %c0_i32_0 = arith.constant 0 : i32
    %c0_i32_1 = arith.constant 0 : i32
    return %c0_i32, %c0_i32_0 : i32, i32
  }
  func.func @transform_6(%arg0: i32, %arg1: i32) -> (i32, i32) {
    %c0_i32 = arith.constant 0 : i32
    %c0_i32_0 = arith.constant 0 : i32
    %c0_i32_1 = arith.constant 0 : i32
    return %c0_i32, %c0_i32_0 : i32, i32
  }
  func.func @transform_7(%arg0: i32, %arg1: i32) -> (i32, i32) {
    %c0_i32 = arith.constant 0 : i32
    %c0_i32_0 = arith.constant 0 : i32
    %c0_i32_1 = arith.constant 0 : i32
    return %c0_i32, %c0_i32_0 : i32, i32
  }
  func.func @transform_8(%arg0: i32, %arg1: i32) -> (i32, i32) {
    %c0_i32 = arith.constant 0 : i32
    %c0_i32_0 = arith.constant 0 : i32
    %c0_i32_1 = arith.constant 0 : i32
    return %c0_i32, %c0_i32_0 : i32, i32
  }
  func.func @transform_9(%arg0: i32, %arg1: i32) -> (i32, i32) {
    %c0_i32 = arith.constant 0 : i32
    %c0_i32_0 = arith.constant 0 : i32
    %c0_i32_1 = arith.constant 0 : i32
    return %c0_i32, %c0_i32_0 : i32, i32
  }
  func.func @transform_10(%arg0: i32, %arg1: i32) -> (i32, i32, i32) {
    %c0_i32 = arith.constant 0 : i32
    %c0_i32_0 = arith.constant 0 : i32
    return %arg0, %arg1, %c0_i32 : i32, i32, i32
  }
}

</mosaic_0001>

<bundles_post_ra>
// kernel: tile.33
= control target key start
LH: loop header
LB: loop body
LE: loop exit
PB: predicated region body
PF: predicated region fallthrough
CT: control target
= control target key end

     0   :  { %s28_s0 = inlined_call_operand.vmem [shape: f32[8], index: 0, kind: input, shape index: {}]   ;;  %s29_s1 = inlined_call_operand.vmem [shape: f32[16,8], index: 1, kind: output, shape index: {}]  }
   0x1   :  { %v4_v0 = vld [vmem:[%s28_s0] ss:$0 sm:$0xff] }
   0x2   :  { %5 = vst [vmem:[%s29_s1] sm:$0xff] %v4_v0 }
   0x3   :  { %8 = vst [vmem:[%s29_s1 + $0x8] sm:$0xff] %v4_v0 }

// kernel: tile.34
= control target key start
LH: loop header
LB: loop body
LE: loop exit
PB: predicated region body
PF: predicated region fallthrough
CT: control target
= control target key end

     0   :  { %s131_s10 = smov 120   ;;  %s132_s11 = smov 104   ;;  %vm3_vm0 = vcmask 64512   ;;  %vm9_vm1 = vcmask 1048512   ;;  %vm15_vm2 = vcmask 982912   ;;  %vm21_vm3 = vcmask 917312   ;;  %s207_s0 = inlined_call_operand.vmem [shape: f32[16,8], index: 0, kind: input, shape index: {}]   ;;  %s208_s1 = inlined_call_operand.vmem [shape: f32[1,128], index: 1, kind: output, shape index: {}]  }
   0x1   :  { %v101_v0 = vld [vmem:[%s207_s0 + $0xf] sm:$0x1]   ;;  %v103_v1 = vld [vmem:[%s207_s0 + $0xd] sm:$0x1]   ;;  %v105_v2 = vld [vmem:[%s207_s0 + $0xb] sm:$0x1]  }
   0x2   :  { %7 = vrot.lane.b32.xlu0 %v101_v0, %s131_s10  ;;  %19 = vrot.lane.b32.xlu1 %v103_v1, %s132_s11  ;;  %s133_s14 = smov 88   ;;  %v102_v3 = vld [vmem:[%s207_s0 + $0xe] sm:$0x1]   ;;  %v104_v4 = vld [vmem:[%s207_s0 + $0xc] sm:$0x1]   ;;  %s134_s19 = smov 112  }
   0x3   :  { %31 = vrot.lane.b32.xlu2 %v105_v2, %s133_s14  ;;  %s135_s20 = smov 96   ;;  %v106_v5 = vld [vmem:[%s207_s0 + $0xa] sm:$0x1]   ;;  %s136_s23 = smov 80   ;;  %v107_v6 = vld [vmem:[%s207_s0 + $0x9] sm:$0x1]  }
   0x4   :  { %v108_v7 = vld [vmem:[%s207_s0 + $0x8] sm:$0x1]   ;;  %s137_s28 = smov 72   ;;  %s138_s29 = smov 64   ;;  %v109_v8 = vld [vmem:[%s207_s0 + $0x7] sm:$0x1]  }
   0x5   :  { %s139_s3 = smov 56   ;;  %v110_v9 = vld [vmem:[%s207_s0 + $0x6] sm:$0x1]   ;;  %v111_v10 = vld [vmem:[%s207_s0 + $0x5] sm:$0x1]   ;;  %s140_s8 = smov 48  }
   0x6   :  { %s141_s9 = smov 40   ;;  %v112_v11 = vld [vmem:[%s207_s0 + $0x4] sm:$0x1]   ;;  %s142_s12 = smov 32   ;;  %v113_v12 = vld [vmem:[%s207_s0 + $0x3] sm:$0x1]  }
   0x7   :  { %v114_v13 = vld [vmem:[%s207_s0 + $0x2] sm:$0x1]   ;;  %s143_s17 = smov 24   ;;  %s144_s18 = smov 16   ;;  %v115_v14 = vld [vmem:[%s207_s0 + $0x1] sm:$0x1]  }
   0x8   :  { %s145_s21 = smov 8   ;;  %v2_v15 = vld [vmem:[%s207_s0] sm:$0x1]   ;;  %vm27_vm4 = vcmask 851712   ;;  %vm33_vm5 = vcmask 786112   ;;  %vm39_vm6 = vcmask 720512  }
   0x9   :  { %4 = vst.msk [vmem:[#allocation0] sm:$0x1] %vm3_vm0, %v2_v15   ;;  %vm45_vm7 = vcmask 654912   ;;  %vm51_vm8 = vcmask 589312   ;;  %vm57_vm9 = vcmask 523712   ;;  %vm63_vm10 = vcmask 458112  }
   0xa   :  { %13 = vrot.lane.b32.xlu0 %v102_v3, %s134_s19  ;;  %25 = vrot.lane.b32.xlu1 %v104_v4, %s135_s20  ;;  %vm69_vm11 = vcmask 392512   ;;  %vm75_vm12 = vcmask 326912   ;;  %vm81_vm13 = vcmask 261312   ;;  %vm87_vm14 = vcmask 195712  }
   0xb   :  { %37 = vrot.lane.b32.xlu2 %v106_v5, %s136_s23  ;;  %vm93_vm15 = vcmask 130112  }
  0x12   :  { %43 = vrot.lane.b32.xlu0 %v107_v6, %s137_s28  ;;  %49 = vrot.lane.b32.xlu1 %v108_v7, %s138_s29 }
  0x13   :  { %55 = vrot.lane.b32.xlu2 %v109_v8, %s139_s3 }
  0x1a   :  { %61 = vrot.lane.b32.xlu0 %v110_v9, %s140_s8  ;;  %67 = vrot.lane.b32.xlu1 %v111_v10, %s141_s9 }
  0x1b   :  { %73 = vrot.lane.b32.xlu2 %v112_v11, %s142_s12 }
  0x22   :  { %79 = vrot.lane.b32.xlu0 %v113_v12, %s143_s17  ;;  %85 = vrot.lane.b32.xlu1 %v114_v13, %s144_s18 }
  0x23   :  { %91 = vrot.lane.b32.xlu2 %v115_v14, %s145_s21 }
  0x5d   :  { %v32_v16 = vpop.permute.xlu2 %31  }
  0x65   :  { %v38_v17 = vpop.permute.xlu2 %37  }
  0x6d   :  { %v56_v18 = vpop.permute.xlu2 %55  }
  0x74   :  { %v8_v19 = vpop.permute.xlu0 %7   ;;  %v20_v20 = vpop.permute.xlu1 %19  }
  0x75   :  { %10 = vst.msk [vmem:[#allocation0] sm:$0x1] %vm9_vm1, %v8_v19   ;;  %v74_v21 = vpop.permute.xlu2 %73  }
  0x7c   :  { %v14_v22 = vpop.permute.xlu0 %13   ;;  %v26_v23 = vpop.permute.xlu1 %25  }
  0x7d   :  { %16 = vst.msk [vmem:[#allocation0] sm:$0x1] %vm15_vm2, %v14_v22   ;;  %v92_v24 = vpop.permute.xlu2 %91  }
  0x7e   :  { %22 = vst.msk [vmem:[#allocation0] sm:$0x1] %vm21_vm3, %v20_v20  }
  0x7f   :  { %28 = vst.msk [vmem:[#allocation0] sm:$0x1] %vm27_vm4, %v26_v23  }
  0x80   :  { %34 = vst.msk [vmem:[#allocation0] sm:$0x1] %vm33_vm5, %v32_v16  }
  0x81   :  { %40 = vst.msk [vmem:[#allocation0] sm:$0x1] %vm39_vm6, %v38_v17  }
  0x84   :  { %v44_v25 = vpop.permute.xlu0 %43   ;;  %v50_v26 = vpop.permute.xlu1 %49  }
  0x85   :  { %46 = vst.msk [vmem:[#allocation0] sm:$0x1] %vm45_vm7, %v44_v25  }
  0x86   :  { %52 = vst.msk [vmem:[#allocation0] sm:$0x1] %vm51_vm8, %v50_v26  }
  0x87   :  { %58 = vst.msk [vmem:[#allocation0] sm:$0x1] %vm57_vm9, %v56_v18  }
  0x8c   :  { %v62_v27 = vpop.permute.xlu0 %61   ;;  %v68_v28 = vpop.permute.xlu1 %67  }
  0x8d   :  { %64 = vst.msk [vmem:[#allocation0] sm:$0x1] %vm63_vm10, %v62_v27  }
  0x8e   :  { %70 = vst.msk [vmem:[#allocation0] sm:$0x1] %vm69_vm11, %v68_v28  }
  0x8f   :  { %76 = vst.msk [vmem:[#allocation0] sm:$0x1] %vm75_vm12, %v74_v21  }
  0x94   :  { %v80_v29 = vpop.permute.xlu0 %79   ;;  %v86_v30 = vpop.permute.xlu1 %85  }
  0x95   :  { %82 = vst.msk [vmem:[#allocation0] sm:$0x1] %vm81_vm13, %v80_v29  }
  0x96   :  { %88 = vst.msk [vmem:[#allocation0] sm:$0x1] %vm87_vm14, %v86_v30  }
  0x97   :  { %94 = vst.msk [vmem:[#allocation0] sm:$0x1] %vm93_vm15, %v92_v24  }
  0x9e   :  { %v97_v31 = vld [vmem:[#allocation0] sm:$0x1] }
  0x9f   :  { %100 = vst [vmem:[%s208_s1] sm:$0x1] %v97_v31 }

// kernel: block_with_shortcut_forward.1
= control target key start
LH: loop header
LB: loop body
LE: loop exit
PB: predicated region body
PF: predicated region fallthrough
CT: control target
= control target key end

     0   :  { %s1401_s13 = smov 0   ;;  %s1403_s14 = smov 0   ;;  %s1621_s0 = inlined_call_operand.vmem [shape: f32[2,20,64], index: 0, kind: input, shape index: {}]   ;;  %s1622_s1 = inlined_call_operand.vmem [shape: bf16[3,64,128], index: 1, kind: input, shape index: {}]   ;;  %s1623_s2 = inlined_call_operand.vmem [shape: f32[1,128], index: 2, kind: input, shape index: {}]   ;;  %s1624_s3 = inlined_call_operand.vmem [shape: f32[1,128], index: 3, kind: input, shape index: {}]   ;;  %s1625_s4 = inlined_call_operand.vmem [shape: bf16[3,128,128], index: 4, kind: input, shape index: {}]   ;;  %s1626_s5 = inlined_call_operand.vmem [shape: f32[1,128], index: 5, kind: input, shape index: {}]   ;;  %s1627_s6 = inlined_call_operand.vmem [shape: f32[1,128], index: 6, kind: input, shape index: {}]   ;;  %s1628_s7 = inlined_call_operand.vmem [shape: bf16[64,128], index: 7, kind: input, shape index: {}]   ;;  %s1629_s8 = inlined_call_operand.vmem [shape: f32[1,128], index: 8, kind: input, shape index: {}]   ;;  %s1630_s9 = inlined_call_operand.vmem [shape: f32[1,128], index: 9, kind: input, shape index: {}]   ;;  %s1631_s10 = inlined_call_operand.vmem [shape: f32[2,16,128], index: 10, kind: output, shape index: {}]  }
   0x1   :  { %s1405_s15 = smov 0   ;;  %s1407_s16 = smov 0  }
   0x2   :  { %s1409_s17 = smov 0  }
   0x3 LB: > { %s29_s18 = sadd.s32 1, %s1336_s15  ;;  %s32_s19 = sadd.s32 1, %s1340_s16  ;;  %s1344_s17 = sphi %s1409_s17, %s20_s17   ;;  %s1340_s16 = sphi %s1407_s16, %s1639_s16   ;;  %s1336_s15 = sphi %s1405_s15, %s1638_s15   ;;  %s1332_s14 = sphi %s1403_s14, %s1637_s14   ;;  %s1328_s13 = sphi %s1401_s13, %s1636_s13  }
   0x4   : > { %p30_p0 = scmp.ge.s32.totalorder %s29_s18, 2  ;;  %p989_p1 = scmp.ge.s32.totalorder %s1344_s17, 1 }
   0x5   : > { %p326_p2 = scmp.lt.s32.totalorder %s1344_s17, 5 }
   0x6   : > { %s1641_s18 = smov (%p30_p0, %s29_s18), 0  ;;  %s1643_s19 = smov (!%p30_p0, %s32_s19), %s1340_s16 }
   0x7   : > { %p327_p3 = pnand %p989_p1, %p326_p2  ;;  %p34_p4 = scmp.ge.s32.totalorder %s1643_s19, 2 }
   0x8   : > { %p367_p5 = scmp.lt.s32.totalorder (!%p327_p3), %s1332_s14, 1  ;;  %s993_s20 = sshll.u32 (!%p327_p3), %s1328_s13, 3 }
   0x9   : > { %s1645_s19 = smov (%p34_p4, %s1643_s19), 0  ;;  %330 = sbr.rel (%p327_p3) target bundleno = 334 (0x14e), region = 60 }
   0xa   : > { %1632 = sst [smem:[#allocation2_spill]] %s1645_s19  ;;  %s1067_s19 = sadd.s32 (!%p327_p3), 4294967295, %s993_s20 }
   0xb   : > { %p374_p6 = scmp.lt.s32.totalorder (!%p327_p3), %s1328_s13, 1 }
   0xe   : > { %v1226_v0 = vld [vmem:[%s1622_s1 + $0x38] sm:$0xff]  ;;  %v1225_v3 = vld [vmem:[%s1622_s1 + $0x30] sm:$0xff]  ;;  %s1647_s14 = smov (!%p367_p5, %s1332_s14), 1  ;;  %v1224_v6 = vld [vmem:[%s1622_s1 + $0x28] sm:$0xff]  ;;  %vm432_vm0 = vcmask 523264   ;;  %v562_v50 = vlaneseq  ;;  %v566_v54 = vstv %s1067_s19  ;;  %s1649_s13 = smov (!%p374_p6, %s1328_s13), 1 }
   0xf   : > { %v1222_v1 = vld [vmem:[%s1622_s1 + $0x18] sm:$0xff]  ;;  %440 = vmatpush.bf16.msra.mxu0 %v1226_v0  ;;  %v1221_v4 = vld [vmem:[%s1622_s1 + $0x10] sm:$0xff]  ;;  %s1259_s12 = smul.u32 24, %s1647_s14  ;;  %v1220_v7 = vld [vmem:[%s1622_s1 + $0x8] sm:$0xff]  ;;  %s991_s24 = sshll.u32 %s1647_s14, 1 }
  0x10   : > { %v1230_v2 = vld [vmem:[%s1622_s1 + $0x58] sm:$0xff]  ;;  %481 = vmatpush.bf16.msra.mxu1 %v1222_v1  ;;  %v1229_v5 = vld [vmem:[%s1622_s1 + $0x50] sm:$0xff]  ;;  %v1228_v8 = vld [vmem:[%s1622_s1 + $0x48] sm:$0xff]  ;;  %v563_v53 = vshrl.u32 %v562_v50, 7  ;;  %s377_s19 = sadd.s32 %s991_s24, %s1649_s13 }
  0x11   : > { %536 = vmatpush.bf16.msra.mxu2 %v1230_v2  ;;  %s371_s27 = scalar_lea.vmem %s1621_s0, %s1259_s12  ;;  %v1223_v9 = vld [vmem:[%s1622_s1 + $0x20] sm:$0xff]  ;;  %v1238_v18 = vld [vmem:[%s1625_s4 + $0x38] sm:$0xff]  ;;  %v1237_v23 = vld [vmem:[%s1625_s4 + $0x30] sm:$0xff]  ;;  %s992_s28 = sshll.u32 %s377_s19, 3 }
  0x12   : > { %s382_s30 = scalar_lea.vmem %s371_s27, %s993_s20  ;;  %v1219_v10 = vld [vmem:[%s1622_s1] sm:$0xff]  ;;  %v1254_v19 = vld [vmem:[%s1625_s4 + $0xb8] sm:$0xff]  ;;  %v1236_v24 = vld [vmem:[%s1625_s4 + $0x28] sm:$0xff]  ;;  %v567_v56 = vadd.s32 %v566_v54, %v563_v53  ;;  %v564_v62 = vadd.s32 8, %v563_v53  ;;  %s379_s14 = scalar_lea.vmem %s1631_s10, %s992_s28 }
  0x13   : > { %441 = vmatpush.bf16.msra.mxu0 %v1225_v3  ;;  %v1227_v11 = vld [vmem:[%s1622_s1 + $0x40] sm:$0xff]  ;;  %v996_v13 = vld [vmem:[%s382_s30 + $0x9] sm:$0x3]  ;;  %v1246_v26 = vld [vmem:[%s1625_s4 + $0x78] sm:$0xff] }
  0x14   : > { %482 = vmatpush.bf16.msra.mxu1 %v1221_v4  ;;  %v995_v12 = vld [vmem:[%s382_s30 + $0x1] sm:$0xff]  ;;  %v1041_v17 = vld [vmem:[%s382_s30 + $0xa] sm:$0x3]  ;;  %v1253_v27 = vld [vmem:[%s1625_s4 + $0xb0] sm:$0xff]  ;;  %668 = vmatpush.bf16.msra.mxu3 %v1246_v26  ;;  %vm569_vm1 = vcmp.ge.s32.totalorder %v567_v56, 0  ;;  %vm571_vm2 = vcmp.lt.s32.totalorder %v567_v56, 16 }
  0x15   : > { %537 = vmatpush.bf16.msra.mxu2 %v1229_v5  ;;  %v383_v14 = vld [vmem:[%s382_s30] sm:$0xff]  ;;  %v384_v15 = vld [vmem:[%s382_s30 + $0x8] sm:$0x3]  ;;  %v398_v20 = vpack.c.bf16 %v996_v13, %v995_v12  ;;  %v1234_v28 = vld [vmem:[%s1625_s4 + $0x18] sm:$0xff]  ;;  %v568_v5 = vadd.s32 %v566_v54, %v564_v62 }
  0x16   : > { %v1478_v16 = vld [vmem:[%s382_s30 + $0x2] sm:$0xff]  ;;  %v385_v21 = vpack.c.bf16 %v384_v15, %v383_v14  ;;  %v1245_v29 = vld [vmem:[%s1625_s4 + $0x70] sm:$0xff]  ;;  %v1250_v36 = vld [vmem:[%s1625_s4 + $0x98] sm:$0xff] }
  0x17   : > { %442 = vmatpush.bf16.msra.mxu0 %v1224_v6  ;;  %v495_v22 = vpack.c.bf16 %v1041_v17, %v1478_v16  ;;  %v1235_v25 = vld [vmem:[%s1625_s4 + $0x20] sm:$0xff]  ;;  %v1252_v30 = vld [vmem:[%s1625_s4 + $0xa8] sm:$0xff]  ;;  %v1233_v31 = vld [vmem:[%s1625_s4 + $0x10] sm:$0xff]  ;;  %v835_v48 = vpack.c.bf16 %v1478_v16, %v1478_v16  ;;  %vm570_vm5 = vcmp.ge.s32.totalorder %v568_v5, 0  ;;  %vm572_vm6 = vcmp.lt.s32.totalorder %v568_v5, 16 }
  0x18   : > { %483 = vmatpush.bf16.msra.mxu1 %v1220_v7  ;;  %669 = vmatpush.bf16.msra.mxu3 %v1245_v29  ;;  %v1244_v32 = vld [vmem:[%s1625_s4 + $0x68] sm:$0xff]  ;;  %v1251_v33 = vld [vmem:[%s1625_s4 + $0xa0] sm:$0xff]  ;;  %v1258_v37 = vld [vmem:[%s1628_s7 + $0x18] sm:$0xff] }
  0x19   : > { %538 = vmatpush.bf16.msra.mxu2 %v1228_v8  ;;  %v1232_v34 = vld [vmem:[%s1625_s4 + $0x8] sm:$0xff]  ;;  %v1243_v35 = vld [vmem:[%s1625_s4 + $0x60] sm:$0xff]  ;;  %v1242_v39 = vld [vmem:[%s1625_s4 + $0x58] sm:$0xff] }
  0x1a   : > { %v1231_v38 = vld [vmem:[%s1625_s4] sm:$0xff]  ;;  %v1249_v40 = vld [vmem:[%s1625_s4 + $0x90] sm:$0xff]  ;;  %v1248_v43 = vld [vmem:[%s1625_s4 + $0x88] sm:$0xff] }
  0x1b   : > { %443 = vmatpush.bf16.msra.mxu0 %v1223_v9  ;;  %v1257_v41 = vld [vmem:[%s1628_s7 + $0x10] sm:$0xff]  ;;  %v1256_v44 = vld [vmem:[%s1628_s7 + $0x8] sm:$0xff]  ;;  %v1247_v46 = vld [vmem:[%s1625_s4 + $0x80] sm:$0xff] }
  0x1c   : > { %484 = vmatpush.bf16.msra.mxu1 %v1219_v10  ;;  %670 = vmatpush.bf16.msra.mxu3 %v1244_v32  ;;  %v1241_v42 = vld [vmem:[%s1625_s4 + $0x50] sm:$0xff]  ;;  %v1240_v45 = vld [vmem:[%s1625_s4 + $0x48] sm:$0xff]  ;;  %v1255_v47 = vld [vmem:[%s1628_s7] sm:$0xff] }
  0x1d   : > { %539 = vmatpush.bf16.msra.mxu2 %v1227_v11  ;;  %v1239_v49 = vld [vmem:[%s1625_s4 + $0x40] sm:$0xff]  ;;  %vm1579_vm3 = vmand %vm569_vm1, %vm571_vm2 }
  0x1e   : > { %1021 = vmatmul.msk.bf16.vlgmr.msra.gmra.mxu0 %vm432_vm0, %v398_v20  ;;  %v1300_v57 = vld [vmem:[%s1623_s2] ss:$0 sm:$0xff]  ;;  %vm1148_vm4 = vmpackc.low %vm1579_vm3, %vm1579_vm3 }
  0x1f   : > { %729 = vmatpush.bf16.msrb.mxu0 %v1238_v18  ;;  %1038 = vmatmul.msk.bf16.vlgmr.msra.gmra.mxu1 %vm432_vm0, %v385_v21  ;;  %v1301_v60 = vld [vmem:[%s1624_s3] ss:$0 sm:$0xff]  ;;  %vm574_vm7 = vmand %vm570_vm5, %vm572_vm6 }
  0x20   : > { %810 = vmatpush.bf16.msrb.mxu1 %v1254_v19  ;;  %1066 = vmatmul.msk.bf16.vlgmr.msra.gmra.mxu2 %vm432_vm0, %v495_v22  ;;  %v1303_v29 = vld [vmem:[%s1630_s9] ss:$0 sm:$0xff] }
  0x21   : > { %671 = vmatpush.bf16.msra.mxu3 %v1243_v35  ;;  %875 = vmatpush.bf16.msrb.mxu2 %v1258_v37 }
  0x23   : > { %730 = vmatpush.bf16.msrb.mxu0 %v1237_v23 }
  0x24   : > { %811 = vmatpush.bf16.msrb.mxu1 %v1253_v27 }
  0x25   : > { %672 = vmatpush.bf16.msra.mxu3 %v1242_v39  ;;  %876 = vmatpush.bf16.msrb.mxu2 %v1257_v41 }
  0x27   : > { %731 = vmatpush.bf16.msrb.mxu0 %v1236_v24 }
  0x28   : > { %812 = vmatpush.bf16.msrb.mxu1 %v1252_v30 }
  0x29   : > { %673 = vmatpush.bf16.msra.mxu3 %v1241_v42  ;;  %877 = vmatpush.bf16.msrb.mxu2 %v1256_v44 }
  0x2b   : > { %732 = vmatpush.bf16.msrb.mxu0 %v1235_v25  ;;  %v1302_v25 = vld [vmem:[%s1629_s8] ss:$0 sm:$0xff] }
  0x2c   : > { %813 = vmatpush.bf16.msrb.mxu1 %v1251_v33  ;;  %v1305_v33 = vld [vmem:[%s1627_s6] ss:$0 sm:$0xff] }
  0x2d   : > { %674 = vmatpush.bf16.msra.mxu3 %v1240_v45  ;;  %878 = vmatpush.bf16.msrb.mxu2 %v1255_v47 }
  0x2f   : > { %733 = vmatpush.bf16.msrb.mxu0 %v1234_v28 }
  0x30   : > { %814 = vmatpush.bf16.msrb.mxu1 %v1250_v36  ;;  %1216 = vmatmul.msk.bf16.vlgmr.msrb.gmra.mxu2 %vm432_vm0, %v835_v48 }
  0x31   : > { %675 = vmatpush.bf16.msra.mxu3 %v1239_v49 }
  0x33   : > { %734 = vmatpush.bf16.msrb.mxu0 %v1233_v31  ;;  %v1304_v31 = vld [vmem:[%s1626_s5] ss:$0 sm:$0xff] }
  0x34   : > { %815 = vmatpush.bf16.msrb.mxu1 %v1249_v40 }
  0x37   : > { %735 = vmatpush.bf16.msrb.mxu0 %v1232_v34 }
  0x38   : > { %816 = vmatpush.bf16.msrb.mxu1 %v1248_v43 }
  0x3b   : > { %736 = vmatpush.bf16.msrb.mxu0 %v1231_v38 }
  0x3c   : > { %817 = vmatpush.bf16.msrb.mxu1 %v1247_v46 }
  0x9b   : > { %v445_v51 = vpop.f32.mrf.mxu0 }
  0x9c   : > { %v486_v52 = vpop.f32.mrf.mxu1 }
  0x9d   : > { %v487_v55 = vadd.f32 %v486_v52, %v445_v51 }
  0xa3   : > { %v541_v58 = vpop.f32.mrf.mxu2  ;;  %v447_v63 = vpop.f32.mrf.mxu0 }
  0xa4   : > { %v546_v59 = vadd.f32 %v541_v58, %v487_v55  ;;  %v488_v0 = vpop.f32.mrf.mxu1 }
  0xa5   : > { %v489_v4 = vadd.f32 %v488_v0, %v447_v63 }
  0xa6   : > { %v552_v61 = vmul.f32 %v1300_v57, %v546_v59 }
  0xa8   : > { %v558_v1 = vadd.f32 %v1301_v60, %v552_v61 }
  0xaa   : > { %v560_v3 = vmax.f32 %v558_v1, 0.0 }
  0xab   : > { %v543_v6 = vpop.f32.mrf.mxu2 }
  0xac   : > { %v1149_v7 = vpack.c.bf16 %v560_v3, %v560_v3  ;;  %v547_v8 = vadd.f32 %v543_v6, %v489_v4  ;;  %v575_v13 = vsel %vm1579_vm3, %v560_v3, 0.0 }
  0xae   : > { %v553_v9 = vmul.f32 %v1300_v57, %v547_v8  ;;  %1150 = vmatmul.msk.bf16.vlgmr.msrb.gmra.mxu0 %vm1148_vm4, %v1149_v7 }
  0xb0   : > { %v559_v10 = vadd.f32 %v1301_v60, %v553_v9 }
  0xb2   : > { %v561_v11 = vmax.f32 %v559_v10, 0.0 }
  0xb3   : > { %v880_v20 = vpop.f32.mrf.mxu2 }
  0xb4   : > { %v576_v12 = vsel %vm574_vm7, %v561_v11, 0.0  ;;  %v888_v28 = vmul.f32 %v1302_v25, %v880_v20 }
  0xb5   : > { %v594_v14 = vpack.c.bf16 %v576_v12, %v575_v13 }
  0xb6   : > { %v893_v34 = vadd.f32 %v1303_v29, %v888_v28 }
  0xb7   : > { %v760_v15 = vrot.slane %v594_v14, 1  ;;  %v615_v16 = vshll.u32 %v594_v14, 16  ;;  %v613_v17 = vshrl.u32 %v594_v14, 16 }
  0xb9   : > { %818 = vmatmul.bf16.vlgmr.msrb.gmra.mxu1 %v760_v15  ;;  %v617_v18 = vrot.slane %v615_v16, 1 }
  0xbb   : > { %v618_v19 = vor.u32 %v617_v18, %v613_v17  ;;  %v882_v21 = vpop.f32.mrf.mxu2 }
  0xbd   : > { %676 = vmatmul.bf16.vlgmr.msra.gmra.mxu3 %v618_v19 }
 0x12b   : > { %v738_v22 = vpop.f32.mrf.mxu0 }
 0x133   : > { %v740_v23 = vpop.f32.mrf.mxu0 }
 0x136   : > { %v819_v24 = vpop.f32.mrf.mxu1 }
 0x13e   : > { %v821_v26 = vpop.f32.mrf.mxu1 }
 0x140   : > { %v677_v27 = vpop.f32.mrf.mxu3 }
 0x141   : > { %v739_v30 = vadd.f32 %v738_v22, %v677_v27 }
 0x143   : > { %v823_v32 = vadd.f32 %v819_v24, %v739_v30 }
 0x145   : > { %v828_v35 = vmul.f32 %v1304_v31, %v823_v32 }
 0x147   : > { %v833_v36 = vadd.f32 %v1305_v33, %v828_v35 }
 0x148   : > { %v679_v37 = vpop.f32.mrf.mxu3 }
 0x149   : > { %v894_v38 = vadd.f32 %v893_v34, %v833_v36 }
 0x14b   : > { %v895_v39 = vmax.f32 %v894_v38, 0.0 }
 0x14d   : > { %896 = vst [vmem:[%s379_s14] sm:$0xff] %v895_v39 }
 0x14e PF: > { %s20_s17 = sadd.s32 1, %s1344_s17   ;;  %s1635_s11 = sld [smem:[#allocation2_spill]] }
 0x14f   : > { %p17_p7 = scmp.ge.s32.totalorder %s20_s17, 6   ;;  %s1636_s13 = smov %s1336_s15 }
 0x150   : > { %s1637_s14 = smov %s1340_s16  ;;  %s1638_s15 = smov %s1641_s18 }
 0x151   :  { %19 = sbr.rel (!%p17_p7) target bundleno = 3 (0x3), region = 97 }
 0x154   : > { %s1639_s16 = smov %s1635_s11 }

</bundles_post_ra>
